<compile_context>
chip_gen: v6e
topology: v6e:2x2x1
jax: 0.10.0
libtpu: 0.0.40
codegen_flags: <defaults>
</compile_context>

<pallas_src>
import jax
import jax.numpy as jnp
from jax.experimental import pallas as pl
from jax.experimental.pallas import tpu as pltpu


def _round_up(n, m):
    return ((n + m - 1) // m) * m


def _forward_math(x, w1, b1, w2, b2, w3, b3):
    """Shared math for the kernel body and the pure-JAX reference.

    Matmuls run in bf16 with f32 accumulation; all elementwise work is f32.
    """
    # fc1 + LeakyReLU(0.2)
    h = jnp.dot(x.astype(jnp.bfloat16), w1.astype(jnp.bfloat16),
                preferred_element_type=jnp.float32) + b1
    h = jnp.maximum(h, 0.2 * h)
    # fc2 + LeakyReLU(0.2)
    h = jnp.dot(h.astype(jnp.bfloat16), w2.astype(jnp.bfloat16),
                preferred_element_type=jnp.float32) + b2
    h = jnp.maximum(h, 0.2 * h)
    # fc3 + Sigmoid (stable tanh form -> EUP, no overflow)
    h = jnp.dot(h.astype(jnp.bfloat16), w3.astype(jnp.bfloat16),
                preferred_element_type=jnp.float32) + b3
    return 0.5 * jnp.tanh(0.5 * h) + 0.5


def classifier_kernel(x_ref, w1_ref, b1_ref, w2_ref, b2_ref, w3_ref, b3_ref,
                      o_ref):
    """One batch tile of the whole MLP: 3 MXU matmuls + VPU/EUP elementwise."""
    o_ref[...] = _forward_math(
        x_ref[...], w1_ref[...], b1_ref[...], w2_ref[...], b2_ref[...],
        w3_ref[...], b3_ref[...])


def classifier_forward(x, params, *, batch_tile=1024):
    """x: (B, latent_size) f32. params: dict of (in,out) f32 weights + (1,out) biases."""
    B, latent = x.shape
    _, h1_logical = params["w1"].shape
    _, h2_logical = params["w2"].shape
    _, out_size = params["w3"].shape

    # Lane-dense (multiple-of-128) padded feature dims.
    Lp = _round_up(latent, 128)
    H1 = _round_up(h1_logical, 128)
    H2 = _round_up(h2_logical, 128)
    Op = _round_up(out_size, 128)

    # Batch: sublane-multiple-of-8, tiled at <= batch_tile rows per grid step.
    B8 = _round_up(B, 8)
    TB = batch_tile if B8 > batch_tile else B8
    Bp = _round_up(B8, TB)

    # Zero-pad and cast once outside the kernel (zeros contribute nothing to
    # the matmuls, so padding is mathematically exact).
    xp = jnp.zeros((Bp, Lp), jnp.bfloat16).at[:B, :latent].set(
        x.astype(jnp.bfloat16))
    w1 = jnp.zeros((Lp, H1), jnp.bfloat16).at[:latent, :h1_logical].set(
        params["w1"].astype(jnp.bfloat16))
    b1 = jnp.zeros((1, H1), jnp.float32).at[:, :h1_logical].set(params["b1"])
    w2 = jnp.zeros((H1, H2), jnp.bfloat16).at[:h1_logical, :h2_logical].set(
        params["w2"].astype(jnp.bfloat16))
    b2 = jnp.zeros((1, H2), jnp.float32).at[:, :h2_logical].set(params["b2"])
    w3 = jnp.zeros((H2, Op), jnp.bfloat16).at[:h2_logical, :out_size].set(
        params["w3"].astype(jnp.bfloat16))
    b3 = jnp.zeros((1, Op), jnp.float32).at[:, :out_size].set(params["b3"])

    grid = (Bp // TB,)
    out_padded = pl.pallas_call(
        classifier_kernel,
        out_shape=jax.ShapeDtypeStruct((Bp, Op), jnp.float32),
        grid=grid,
        in_specs=[
            # Batch-tiled activation input (double-buffered by Pallas).
            pl.BlockSpec((TB, Lp), lambda i: (i, 0)),
            # Weights / biases: constant index_map -> resident across steps.
            pl.BlockSpec((Lp, H1), lambda i: (0, 0)),
            pl.BlockSpec((1, H1), lambda i: (0, 0)),
            pl.BlockSpec((H1, H2), lambda i: (0, 0)),
            pl.BlockSpec((1, H2), lambda i: (0, 0)),
            pl.BlockSpec((H2, Op), lambda i: (0, 0)),
            pl.BlockSpec((1, Op), lambda i: (0, 0)),
        ],
        out_specs=pl.BlockSpec((TB, Op), lambda i: (i, 0)),
        compiler_params=pltpu.CompilerParams(
            dimension_semantics=("parallel",)),
    )(xp, w1, b1, w2, b2, w3, b3)

    return out_padded[:B, :out_size]


def init_params(key, latent_size, output_size):
    """Deterministic init mirroring PyTorch nn.Linear default (U(-1/sqrt(in), 1/sqrt(in))).
    Weights stored as (in_features, out_features)."""
    dims = [(latent_size, 100), (100, 50), (50, output_size)]
    params = {}
    for i, (fin, fout) in enumerate(dims, start=1):
        key, kw, kb = jax.random.split(key, 3)
        bound = 1.0 / jnp.sqrt(jnp.float32(fin))
        params[f"w{i}"] = jax.random.uniform(
            kw, (fin, fout), jnp.float32, minval=-bound, maxval=bound)
        params[f"b{i}"] = jax.random.uniform(
            kb, (1, fout), jnp.float32, minval=-bound, maxval=bound)
    return params


def classifier_ref(x, params):
    """Pure-JAX reference using the exact same math path (bf16 matmuls, f32 acc)."""
    return _forward_math(x, params["w1"], params["b1"], params["w2"],
                         params["b2"], params["w3"], params["b3"])


if __name__ == "__main__":
    latent_size = 32
    output_size = 4
    batch = 2

    key = jax.random.PRNGKey(0)
    key, kx = jax.random.split(key)
    x = jax.random.normal(kx, (batch, latent_size), jnp.float32)
    params = init_params(key, latent_size, output_size)

    out = classifier_forward(x, params)
    out = jax.block_until_ready(out)

    ref = classifier_ref(x, params)
    assert out.shape == (batch, output_size), out.shape
    assert jnp.allclose(out, ref, atol=1e-4, rtol=1e-4), "mismatch vs reference"

    print("KERNEL_OK")
</pallas_src>

<mosaic_0001>
module attributes {stable_mosaic.version = 11 : i64} {
  func.func @classifier_kernel(%arg0: i32, %arg1: memref<8x128xbf16, #tpu.memory_space<vmem>>, %arg2: memref<128x128xbf16, #tpu.memory_space<vmem>>, %arg3: memref<1x128xf32, #tpu.memory_space<vmem>>, %arg4: memref<128x128xbf16, #tpu.memory_space<vmem>>, %arg5: memref<1x128xf32, #tpu.memory_space<vmem>>, %arg6: memref<128x128xbf16, #tpu.memory_space<vmem>>, %arg7: memref<1x128xf32, #tpu.memory_space<vmem>>, %arg8: memref<8x128xf32, #tpu.memory_space<vmem>>) attributes {dimension_semantics = [#tpu.dimension_semantics<parallel>], iteration_bounds = array<i64: 1>, scalar_prefetch = 0 : i64, scratch_operands = 0 : i64, tpu.core_type = #tpu.core_type<tc>, window_params = [{transform_indices = @transform_0, window_bounds = array<i64: 8, 128>}, {pipeline_mode = #tpu.pipeline_mode<synchronous>, transform_indices = @transform_1, window_bounds = array<i64: 128, 128>}, {pipeline_mode = #tpu.pipeline_mode<synchronous>, transform_indices = @transform_2, window_bounds = array<i64: 1, 128>}, {pipeline_mode = #tpu.pipeline_mode<synchronous>, transform_indices = @transform_3, window_bounds = array<i64: 128, 128>}, {pipeline_mode = #tpu.pipeline_mode<synchronous>, transform_indices = @transform_4, window_bounds = array<i64: 1, 128>}, {pipeline_mode = #tpu.pipeline_mode<synchronous>, transform_indices = @transform_5, window_bounds = array<i64: 128, 128>}, {pipeline_mode = #tpu.pipeline_mode<synchronous>, transform_indices = @transform_6, window_bounds = array<i64: 1, 128>}, {transform_indices = @transform_7, window_bounds = array<i64: 8, 128>}]} {
    %c0 = arith.constant 0 : index
    %c0_0 = arith.constant 0 : index
    %0 = vector.load %arg1[%c0, %c0_0] : memref<8x128xbf16, #tpu.memory_space<vmem>>, vector<8x128xbf16>
    %c0_1 = arith.constant 0 : index
    %c0_2 = arith.constant 0 : index
    %1 = vector.load %arg2[%c0_1, %c0_2] : memref<128x128xbf16, #tpu.memory_space<vmem>>, vector<128x128xbf16>
    %c0_3 = arith.constant 0 : index
    %c0_4 = arith.constant 0 : index
    %2 = vector.load %arg3[%c0_3, %c0_4] : memref<1x128xf32, #tpu.memory_space<vmem>>, vector<1x128xf32>
    %c0_5 = arith.constant 0 : index
    %c0_6 = arith.constant 0 : index
    %3 = vector.load %arg4[%c0_5, %c0_6] : memref<128x128xbf16, #tpu.memory_space<vmem>>, vector<128x128xbf16>
    %c0_7 = arith.constant 0 : index
    %c0_8 = arith.constant 0 : index
    %4 = vector.load %arg5[%c0_7, %c0_8] : memref<1x128xf32, #tpu.memory_space<vmem>>, vector<1x128xf32>
    %c0_9 = arith.constant 0 : index
    %c0_10 = arith.constant 0 : index
    %5 = vector.load %arg6[%c0_9, %c0_10] : memref<128x128xbf16, #tpu.memory_space<vmem>>, vector<128x128xbf16>
    %c0_11 = arith.constant 0 : index
    %c0_12 = arith.constant 0 : index
    %6 = vector.load %arg7[%c0_11, %c0_12] : memref<1x128xf32, #tpu.memory_space<vmem>>, vector<1x128xf32>
    %cst = arith.constant dense<0.000000e+00> : vector<8x128xf32>
    %7 = tpu.matmul %0, %1, %cst {dimension_numbers = #tpu.dot_dimension_numbers<[1], [0], [0], [1], [0, 0, 1, 1], [], []>} : vector<8x128xbf16>, vector<128x128xbf16>, vector<8x128xf32> -> vector<8x128xf32>
    %8 = vector.broadcast %2 : vector<1x128xf32> to vector<8x128xf32>
    %9 = arith.addf %7, %8 : vector<8x128xf32>
    %cst_13 = arith.constant 2.000000e-01 : f32
    %10 = vector.broadcast %cst_13 : f32 to vector<8x128xf32>
    %11 = arith.mulf %10, %9 : vector<8x128xf32>
    %12 = arith.maximumf %9, %11 : vector<8x128xf32>
    %13 = arith.truncf %12 : vector<8x128xf32> to vector<8x128xbf16>
    %cst_14 = arith.constant dense<0.000000e+00> : vector<8x128xf32>
    %14 = tpu.matmul %13, %3, %cst_14 {dimension_numbers = #tpu.dot_dimension_numbers<[1], [0], [0], [1], [0, 0, 1, 1], [], []>} : vector<8x128xbf16>, vector<128x128xbf16>, vector<8x128xf32> -> vector<8x128xf32>
    %15 = vector.broadcast %4 : vector<1x128xf32> to vector<8x128xf32>
    %16 = arith.addf %14, %15 : vector<8x128xf32>
    %cst_15 = arith.constant 2.000000e-01 : f32
    %17 = vector.broadcast %cst_15 : f32 to vector<8x128xf32>
    %18 = arith.mulf %17, %16 : vector<8x128xf32>
    %19 = arith.maximumf %16, %18 : vector<8x128xf32>
    %20 = arith.truncf %19 : vector<8x128xf32> to vector<8x128xbf16>
    %cst_16 = arith.constant dense<0.000000e+00> : vector<8x128xf32>
    %21 = tpu.matmul %20, %5, %cst_16 {dimension_numbers = #tpu.dot_dimension_numbers<[1], [0], [0], [1], [0, 0, 1, 1], [], []>} : vector<8x128xbf16>, vector<128x128xbf16>, vector<8x128xf32> -> vector<8x128xf32>
    %22 = vector.broadcast %6 : vector<1x128xf32> to vector<8x128xf32>
    %23 = arith.addf %21, %22 : vector<8x128xf32>
    %cst_17 = arith.constant 5.000000e-01 : f32
    %24 = vector.broadcast %cst_17 : f32 to vector<8x128xf32>
    %25 = arith.mulf %24, %23 : vector<8x128xf32>
    %26 = math.tanh %25 : vector<8x128xf32>
    %cst_18 = arith.constant 5.000000e-01 : f32
    %27 = vector.broadcast %cst_18 : f32 to vector<8x128xf32>
    %28 = arith.mulf %27, %26 : vector<8x128xf32>
    %cst_19 = arith.constant 5.000000e-01 : f32
    %29 = vector.broadcast %cst_19 : f32 to vector<8x128xf32>
    %30 = arith.addf %28, %29 : vector<8x128xf32>
    %c0_20 = arith.constant 0 : index
    %c0_21 = arith.constant 0 : index
    %31 = vector.load %arg8[%c0_20, %c0_21] : memref<8x128xf32, #tpu.memory_space<vmem>>, vector<8x128xf32>
    tpu.vector_store %arg8[%c0_20, %c0_21], %30 {strides = array<i32>} : memref<8x128xf32, #tpu.memory_space<vmem>>, vector<8x128xf32>,
    return
  }
  func.func @transform_0(%arg0: i32) -> (i32, i32) {
    %c0_i32 = arith.constant 0 : i32
    %c0_i32_0 = arith.constant 0 : i32
    return %arg0, %c0_i32 : i32, i32
  }
  func.func @transform_1(%arg0: i32) -> (i32, i32) {
    %c0_i32 = arith.constant 0 : i32
    %c0_i32_0 = arith.constant 0 : i32
    %c0_i32_1 = arith.constant 0 : i32
    return %c0_i32, %c0_i32_0 : i32, i32
  }
  func.func @transform_2(%arg0: i32) -> (i32, i32) {
    %c0_i32 = arith.constant 0 : i32
    %c0_i32_0 = arith.constant 0 : i32
    %c0_i32_1 = arith.constant 0 : i32
    return %c0_i32, %c0_i32_0 : i32, i32
  }
  func.func @transform_3(%arg0: i32) -> (i32, i32) {
    %c0_i32 = arith.constant 0 : i32
    %c0_i32_0 = arith.constant 0 : i32
    %c0_i32_1 = arith.constant 0 : i32
    return %c0_i32, %c0_i32_0 : i32, i32
  }
  func.func @transform_4(%arg0: i32) -> (i32, i32) {
    %c0_i32 = arith.constant 0 : i32
    %c0_i32_0 = arith.constant 0 : i32
    %c0_i32_1 = arith.constant 0 : i32
    return %c0_i32, %c0_i32_0 : i32, i32
  }
  func.func @transform_5(%arg0: i32) -> (i32, i32) {
    %c0_i32 = arith.constant 0 : i32
    %c0_i32_0 = arith.constant 0 : i32
    %c0_i32_1 = arith.constant 0 : i32
    return %c0_i32, %c0_i32_0 : i32, i32
  }
  func.func @transform_6(%arg0: i32) -> (i32, i32) {
    %c0_i32 = arith.constant 0 : i32
    %c0_i32_0 = arith.constant 0 : i32
    %c0_i32_1 = arith.constant 0 : i32
    return %c0_i32, %c0_i32_0 : i32, i32
  }
  func.func @transform_7(%arg0: i32) -> (i32, i32) {
    %c0_i32 = arith.constant 0 : i32
    %c0_i32_0 = arith.constant 0 : i32
    return %arg0, %c0_i32 : i32, i32
  }
}

</mosaic_0001>

<bundles_post_ra>
// kernel: tpu_custom_call.1
= control target key start
LH: loop header
LB: loop body
LE: loop exit
PB: predicated region body
PF: predicated region fallthrough
CT: control target
= control target key end

     0   :  { %12 = vsyncpa [#allocation3], 0  ;;  %s812_s0 = inlined_call_operand.hbm [shape: bf16[8,128], index: 0, kind: input, shape index: {}]   ;;  %s813_s1 = inlined_call_operand.hbm [shape: bf16[128,128], index: 1, kind: input, shape index: {}]   ;;  %s814_s2 = inlined_call_operand.vmem [shape: f32[1,128], index: 2, kind: input, shape index: {}]   ;;  %s815_s3 = inlined_call_operand.hbm [shape: bf16[128,128], index: 3, kind: input, shape index: {}]   ;;  %s816_s4 = inlined_call_operand.vmem [shape: f32[1,128], index: 4, kind: input, shape index: {}]   ;;  %s817_s5 = inlined_call_operand.hbm [shape: bf16[128,128], index: 5, kind: input, shape index: {}]   ;;  %s818_s6 = inlined_call_operand.vmem [shape: f32[1,128], index: 6, kind: input, shape index: {}]   ;;  %s819_s7 = inlined_call_operand.hbm [shape: f32[8,128], index: 7, kind: output, shape index: {}]  }
   0x1   :  { %13 = vsyncpa [#allocation6], 0 }
   0x2   :  { %14 = vsyncpa [#allocation9], 0 }
   0x3   :  { %15 = vsyncpa [#allocation4], 0  ;;  %s700_s24 = smov [#allocation5]  }
   0x4   :  { %s31_s25 = sshll.u32 %s700_s24, 4  ;;  %s32_s25 = int_to_ptr.vmem [resolvable:$true] %s31_s25 }
   0x5   :  { %s600_s26 = scalar_lea.vmem %s32_s25, 1024  ;;  %p605_p1 = scmp.lt.s32.totalorder %s32_s25, %s32_s25 }
   0x6   :  { %p601_p0 = scmp.ne.s32.totalorder %s32_s25, %s600_s26  ;;  %p606_p2 = scmp.lt.s32.totalorder %s600_s26, %s600_s26 }
   0x8   :  { %p607_p3 = por %p606_p2, %p605_p1 }
   0xa   :  { %p608_p4 = pnand %p607_p3, %p601_p0 }
   0xc   :  { %611 = shalt.err (!%p608_p4)
}
   0xd   :  { %s701_s27 = smov 64   ;;  %s702_s28 = smov 4  }
   0xe   :  { %37 = dma.hbm_to_vmem [thread:$0]  %s813_s1, 1024, %s32_s25, [#allocation6], %s701_s27, %s701_s27, %s702_s28  }
   0xf   :  { %s703_s8 = smov [#allocation2]   ;;  %s704_s10 = smov [#allocation7]  }
  0x10   :  { %s22_s9 = sshll.u32 %s703_s8, 4  ;;  %s45_s11 = sshll.u32 %s704_s10, 4  ;;  %s23_s9 = int_to_ptr.vmem [resolvable:$true] %s22_s9  ;;  %s46_s11 = int_to_ptr.vmem [resolvable:$true] %s45_s11 }
  0x11   :  { %s620_s12 = scalar_lea.vmem %s23_s9, 64  ;;  %p625_p6 = scmp.lt.s32.totalorder %s23_s9, %s23_s9 }
  0x12   :  { %p621_p5 = scmp.ne.s32.totalorder %s23_s9, %s620_s12  ;;  %p626_p7 = scmp.lt.s32.totalorder %s620_s12, %s620_s12 }
  0x14   :  { %p627_p8 = por %p626_p7, %p625_p6 }
  0x16   :  { %p628_p9 = pnand %p627_p8, %p621_p5 }
  0x18   :  { %631 = shalt.err (!%p628_p9)
}
  0x19   :  { %25 = dma.hbm_to_vmem [thread:$0]  %s812_s0, 64, %s23_s9, [#allocation3]  }
  0x1a   :  { %s640_s15 = scalar_lea.vmem %s46_s11, 1024  ;;  %p645_p11 = scmp.lt.s32.totalorder %s46_s11, %s46_s11 }
  0x1b   :  { %p641_p10 = scmp.ne.s32.totalorder %s46_s11, %s640_s15  ;;  %p646_p12 = scmp.lt.s32.totalorder %s640_s15, %s640_s15 }
  0x1d   :  { %p647_p13 = por %p646_p12, %p645_p11 }
  0x1f   :  { %p648_p0 = pnand %p647_p13, %p641_p10 }
  0x21   :  { %651 = shalt.err (!%p648_p0)
}
  0x22   :  { %51 = dma.hbm_to_vmem [thread:$0]  %s815_s3, 1024, %s46_s11, [#allocation6], %s701_s27, %s701_s27, %s702_s28  }
  0x23   :  { %s705_s17 = smov [#allocation8]  }
  0x24   :  { %s59_s18 = sshll.u32 %s705_s17, 4  ;;  %s60_s18 = int_to_ptr.vmem [resolvable:$true] %s59_s18 }
  0x25   :  { %s660_s19 = scalar_lea.vmem %s60_s18, 1024  ;;  %p665_p2 = scmp.lt.s32.totalorder %s60_s18, %s60_s18 }
  0x26   :  { %p661_p1 = scmp.ne.s32.totalorder %s60_s18, %s660_s19  ;;  %p666_p3 = scmp.lt.s32.totalorder %s660_s19, %s660_s19 }
  0x28   :  { %p667_p4 = por %p666_p3, %p665_p2 }
  0x2a   :  { %p668_p5 = pnand %p667_p4, %p661_p1 }
  0x2c   :  { %671 = shalt.err (!%p668_p5)
}
  0x2d   :  { %65 = dma.hbm_to_vmem [thread:$0]  %s817_s5, 1024, %s60_s18, [#allocation9], %s701_s27, %s701_s27, %s702_s28  }
  0x2e   :  { %692 = dma.done.wait [#allocation3], 64  }
  0x2f   :  { %693 = vsyncadd [#allocation3], 4294967232 }
  0x30   :  { %694 = dma.done.wait [#allocation6], 2048  }
  0x31   :  { %695 = vsyncadd [#allocation6], 4294965248 }
  0x32   :  { %696 = dma.done.wait [#allocation9], 1024  }
  0x33   :  { %697 = vsyncadd [#allocation9], 4294966272  ;;  %v706_v0 = vmov 0.0   ;;  %vm707_vm0 = vmmov 0   ;;  %v566_v1 = vld [vmem:[#allocation5 + $0x38] sm:$0xff]   ;;  %v567_v2 = vld [vmem:[#allocation5 + $0x30] sm:$0xff]  }
  0x34   :  { %497 = vmatprep.subr.bf16.mxu0 %v706_v0  ;;  %513 = vmatprep.mubr.msk.bf16.mxu0 %vm707_vm0, %v706_v0  ;;  %v568_v3 = vld [vmem:[#allocation5 + $0x28] sm:$0xff]   ;;  %v574_v4 = vld [vmem:[#allocation7 + $0x38] sm:$0xff]   ;;  %v569_v5 = vld [vmem:[#allocation5 + $0x20] sm:$0xff]  }
  0x35   :  { %517 = vmatprep.subr.bf16.mxu1 %v706_v0  ;;  %533 = vmatprep.mubr.msk.bf16.mxu1 %vm707_vm0, %v706_v0  ;;  %v575_v6 = vld [vmem:[#allocation7 + $0x30] sm:$0xff]   ;;  %v570_v7 = vld [vmem:[#allocation5 + $0x18] sm:$0xff]   ;;  %v576_v8 = vld [vmem:[#allocation7 + $0x28] sm:$0xff]  }
  0x36   :  { %498 = vmatpush3.bf16.msra.mxu0 %v566_v1  ;;  %518 = vmatpush3.bf16.msra.mxu1 %v574_v4  ;;  %v571_v9 = vld [vmem:[#allocation5 + $0x10] sm:$0xff]   ;;  %v577_v10 = vld [vmem:[#allocation7 + $0x20] sm:$0xff]   ;;  %v572_v11 = vld [vmem:[#allocation5 + $0x8] sm:$0xff]  }
  0x37   :  { %499 = vmatprep.subr.bf16.mxu0 %v706_v0  ;;  %519 = vmatprep.subr.bf16.mxu1 %v706_v0  ;;  %v578_v12 = vld [vmem:[#allocation7 + $0x18] sm:$0xff]   ;;  %v573_v13 = vld [vmem:[#allocation5] sm:$0xff]   ;;  %v579_v14 = vld [vmem:[#allocation7 + $0x10] sm:$0xff]  }
  0x38   :  { %v81_v15 = vld [vmem:[#allocation2] sm:$0xf]  ;;  %v580_v16 = vld [vmem:[#allocation7 + $0x8] sm:$0xff]   ;;  %v581_v17 = vld [vmem:[#allocation7] sm:$0xff]  }
  0x39   :  { %v582_v18 = vld [vmem:[#allocation8 + $0x38] sm:$0xff]   ;;  %v583_v19 = vld [vmem:[#allocation8 + $0x30] sm:$0xff]   ;;  %v584_v20 = vld [vmem:[#allocation8 + $0x28] sm:$0xff]  }
  0x3a   :  { %500 = vmatpush3.bf16.msra.mxu0 %v567_v2  ;;  %520 = vmatpush3.bf16.msra.mxu1 %v575_v6  ;;  %v585_v21 = vld [vmem:[#allocation8 + $0x20] sm:$0xff]   ;;  %v586_v22 = vld [vmem:[#allocation8 + $0x18] sm:$0xff]   ;;  %v587_v23 = vld [vmem:[#allocation8 + $0x10] sm:$0xff]  }
  0x3b   :  { %501 = vmatprep.subr.bf16.mxu0 %v706_v0  ;;  %521 = vmatprep.subr.bf16.mxu1 %v706_v0  ;;  %v443_v24 = vld [vmem:[%s814_s2] ss:$0 sm:$0xff]  ;;  %v588_v33 = vld [vmem:[#allocation8 + $0x8] sm:$0xff]   ;;  %v589_v34 = vld [vmem:[#allocation8] sm:$0xff]  }
  0x3c   :  { %v452_v35 = vld [vmem:[%s816_s4] ss:$0 sm:$0xff]  ;;  %s708_s4 = smov [#allocation10]  }
  0x3d   :  { %v461_v44 = vld [vmem:[%s818_s6] ss:$0 sm:$0xff]  ;;  %s432_s24 = sshll.u32 %s708_s4, 4  ;;  %s433_s24 = int_to_ptr.vmem [resolvable:$true] %s432_s24 }
  0x3e   :  { %502 = vmatpush3.bf16.msra.mxu0 %v568_v3  ;;  %522 = vmatpush3.bf16.msra.mxu1 %v576_v8  ;;  %s672_s25 = scalar_lea.vmem %s433_s24, 128  ;;  %p677_p7 = scmp.lt.s32.totalorder %s433_s24, %s433_s24 }
  0x3f   :  { %503 = vmatprep.subr.bf16.mxu0 %v706_v0  ;;  %523 = vmatprep.subr.bf16.mxu1 %v706_v0  ;;  %p673_p6 = scmp.ne.s32.totalorder %s433_s24, %s672_s25  ;;  %p678_p8 = scmp.lt.s32.totalorder %s672_s25, %s672_s25 }
  0x41   :  { %p679_p9 = por %p678_p8, %p677_p7 }
  0x42   :  { %504 = vmatpush3.bf16.msra.mxu0 %v569_v5  ;;  %524 = vmatpush3.bf16.msra.mxu1 %v577_v10 }
  0x43   :  { %505 = vmatprep.subr.bf16.mxu0 %v706_v0  ;;  %525 = vmatprep.subr.bf16.mxu1 %v706_v0  ;;  %p680_p10 = pnand %p679_p9, %p673_p6 }
  0x46   :  { %506 = vmatpush3.bf16.msra.mxu0 %v570_v7  ;;  %526 = vmatpush3.bf16.msra.mxu1 %v578_v12 }
  0x47   :  { %507 = vmatprep.subr.bf16.mxu0 %v706_v0  ;;  %527 = vmatprep.subr.bf16.mxu1 %v706_v0 }
  0x4a   :  { %508 = vmatpush3.bf16.msra.mxu0 %v571_v9  ;;  %528 = vmatpush3.bf16.msra.mxu1 %v579_v14 }
  0x4b   :  { %509 = vmatprep.subr.bf16.mxu0 %v706_v0  ;;  %529 = vmatprep.subr.bf16.mxu1 %v706_v0 }
  0x4e   :  { %510 = vmatpush3.bf16.msra.mxu0 %v572_v11  ;;  %530 = vmatpush3.bf16.msra.mxu1 %v580_v16 }
  0x4f   :  { %511 = vmatprep.subr.bf16.mxu0 %v706_v0  ;;  %531 = vmatprep.subr.bf16.mxu1 %v706_v0 }
  0x52   :  { %512 = vmatpush3.bf16.msra.mxu0 %v573_v13  ;;  %532 = vmatpush3.bf16.msra.mxu1 %v581_v17 }
  0x53   :  { %537 = vmatprep.subr.bf16.mxu0 %v706_v0 }
  0x55   :  { %514 = vmatmul.mubr.bf16.vlgmr.msra.gmra.mxu0 %v81_v15 }
  0x56   :  { %553 = vmatprep.mubr.msk.bf16.mxu0 %vm707_vm0, %v706_v0  ;;  %538 = vmatpush3.bf16.msra.mxu0 %v582_v18 }
  0x57   :  { %539 = vmatprep.subr.bf16.mxu0 %v706_v0 }
  0x5a   :  { %540 = vmatpush3.bf16.msra.mxu0 %v583_v19 }
  0x5b   :  { %541 = vmatprep.subr.bf16.mxu0 %v706_v0 }
  0x5e   :  { %542 = vmatpush3.bf16.msra.mxu0 %v584_v20 }
  0x5f   :  { %543 = vmatprep.subr.bf16.mxu0 %v706_v0 }
  0x62   :  { %544 = vmatpush3.bf16.msra.mxu0 %v585_v21 }
  0x63   :  { %545 = vmatprep.subr.bf16.mxu0 %v706_v0 }
  0x66   :  { %546 = vmatpush3.bf16.msra.mxu0 %v586_v22 }
  0x67   :  { %547 = vmatprep.subr.bf16.mxu0 %v706_v0 }
  0x6a   :  { %548 = vmatpush3.bf16.msra.mxu0 %v587_v23 }
  0x6b   :  { %549 = vmatprep.subr.bf16.mxu0 %v706_v0 }
  0x6e   :  { %550 = vmatpush3.bf16.msra.mxu0 %v588_v33 }
  0x6f   :  { %551 = vmatprep.subr.bf16.mxu0 %v706_v0 }
  0x72   :  { %552 = vmatpush3.bf16.msra.mxu0 %v589_v34 }
 0x115   :  { %v221_v25 = vpop.f32.mrf.mxu0 }
 0x116   :  { %v222_v26 = vadd.f32 %v443_v24, %v221_v25 }
 0x117   :  { %v515_v27 = vpop.f32.mrf.mxu0 }
 0x118   :  { %v227_v28 = vmul.f32 0.2, %v222_v26 }
 0x119   :  { %v224_v29 = vpop.f32.mrf.mxu0 }
 0x11a   :  { %v228_v30 = vmax.f32 %v222_v26, %v227_v28 }
 0x11b   :  { %v516_v31 = vpop.f32.mrf.mxu0 }
 0x11c   :  { %v229_v32 = vpack.c.bf16 %v228_v30, %v228_v30 }
 0x11e   :  { %534 = vmatmul.mubr.bf16.vlgmr.msra.gmra.mxu1 %v229_v32 }
 0x1de   :  { %v318_v36 = vpop.f32.mrf.mxu1 }
 0x1df   :  { %v319_v37 = vadd.f32 %v452_v35, %v318_v36 }
 0x1e0   :  { %v535_v38 = vpop.f32.mrf.mxu1 }
 0x1e1   :  { %v324_v39 = vmul.f32 0.2, %v319_v37 }
 0x1e2   :  { %v321_v40 = vpop.f32.mrf.mxu1 }
 0x1e3   :  { %v325_v41 = vmax.f32 %v319_v37, %v324_v39 }
 0x1e4   :  { %v536_v42 = vpop.f32.mrf.mxu1 }
 0x1e5   :  { %v326_v43 = vpack.c.bf16 %v325_v41, %v325_v41 }
 0x1e7   :  { %554 = vmatmul.mubr.bf16.vlgmr.msra.gmra.mxu0 %v326_v43 }
 0x2a7   :  { %v415_v45 = vpop.f32.mrf.mxu0 }
 0x2a8   :  { %v416_v46 = vadd.f32 %v461_v44, %v415_v45 }
 0x2a9   :  { %v555_v47 = vpop.f32.mrf.mxu0 }
 0x2aa   :  { %v421_v48 = vmul.f32 0.5, %v416_v46 }
 0x2ab   :  { %v418_v49 = vpop.f32.mrf.mxu0 }
 0x2ac   :  { %590 = vtanh.f32 %v421_v48 }
 0x2ad   :  { %v556_v50 = vpop.f32.mrf.mxu0 }
 0x2b9   :  { %v591_v51 = vpop.eup %590 }
 0x2ba   :  { %v423_v52 = vmul.f32 0.5, %v591_v51 }
 0x2bc   :  { %v424_v53 = vadd.f32 0.5, %v423_v52 }
 0x2be   :  { %425 = vst [vmem:[#allocation10] sm:$0xff] %v424_v53 }
 0x2bf   :  { %683 = shalt.err (!%p680_p10)
}
 0x2c0   :  { %435 = dma.vmem_to_hbm [thread:$0]  %s433_s24, 128, %s819_s7, [#allocation4]  }
 0x2c1   :  { %698 = dma.done.wait [#allocation4], 128  }
 0x2c2   :  { %699 = vsyncadd [#allocation4], 4294967168 }
 0x2c3   :  { %439 = vsyncpa [#allocation3], 1 }
 0x2c4   :  { %440 = vsyncpa [#allocation6], 1 }
 0x2c5   :  { %441 = vsyncpa [#allocation9], 1 }
 0x2c6   :  { %442 = vsyncpa [#allocation4], 1 }

</bundles_post_ra>
